<compile_context>
chip_gen: v5e
topology: v5e:2x2
jax: 0.10.0
libtpu: 0.0.40
codegen_flags: <defaults>
</compile_context>

<pallas_src>
import functools
import math

import jax
import jax.numpy as jnp
from jax.experimental import pallas as pl
from jax.experimental.pallas import tpu as pltpu


def _round_up(n, m):
    return ((n + m - 1) // m) * m


def _clustering_kernel(x_ref, w_ref, w2_ref, dist1_ref, dist2_ref, *, num_clusters):
    """One batch tile.

    x_ref  : (TB, D)   float32   batch tile
    w_ref  : (Kp, D)   float32   padded centroids (resident)
    w2_ref : (1, Kp)   float32   padded centroid squared norms (resident)
    dist1_ref, dist2_ref : (TB, Kp) float32
    """
    x = x_ref[...]                                   # (TB, D)
    w = w_ref[...]                                   # (Kp, D)
    w2 = w2_ref[...]                                 # (1, Kp)

    # Cross term on the MXU: xw[b, k] = sum_d x[b, d] * w[k, d]
    xw = jax.lax.dot_general(
        x, w,
        dimension_numbers=(((1,), (1,)), ((), ())),
        preferred_element_type=jnp.float32)          # (TB, Kp)

    x2 = jnp.sum(x * x, axis=1, keepdims=True)       # (TB, 1)

    # dist1[b, k] = ||x_b - w_k||^2 ; clamp tiny negatives from cancellation.
    dist1 = jnp.maximum(x2 + w2 - 2.0 * xw, 0.0)     # (TB, Kp)

    # Mask the lane-padding columns (k >= num_clusters).
    col = jax.lax.broadcasted_iota(jnp.int32, dist1.shape, 1)
    valid = col < num_clusters

    dmin = jnp.min(jnp.where(valid, dist1, jnp.inf), axis=1, keepdims=True)
    temp = dist1 - dmin

    # Fused double normalization:
    #   q = exp(-t); q /= sum(q); q = q^2; q /= sum(q)   ==   exp(-2t)/sum(exp(-2t))
    e = jnp.where(valid, jnp.exp(-2.0 * temp), 0.0)
    denom = jnp.sum(e, axis=1, keepdims=True)
    q = e * pl.reciprocal(denom, approx=True)

    dist1_ref[...] = dist1
    dist2_ref[...] = dist1 * q


def clustering_layer(x, weight, *, tile_b=None):
    """Pallas-backed forward of ClusterlingLayer. Returns (dist1, dist2)."""
    B, D = x.shape
    K, D2 = weight.shape
    assert D == D2, "feature dims must match"

    x = x.astype(jnp.float32)
    weight = weight.astype(jnp.float32)

    # Lane-dense cluster dim.
    K_pad = _round_up(K, 128)
    # Batch tile: large on v5e/v6e-sized VMEM; shrink via tile_b on v7x if needed.
    if tile_b is None:
        tile_b = min(512, _round_up(B, 8))
    tile_b = _round_up(tile_b, 8)

    B_pad = _round_up(B, tile_b)
    if B_pad != B:
        x = jnp.pad(x, ((0, B_pad - B), (0, 0)))

    # Zero-padded centroids + their squared norms (computed once, kept resident).
    w_pad = jnp.zeros((K_pad, D), jnp.float32).at[:K, :].set(weight)
    w2 = jnp.sum(w_pad * w_pad, axis=1)[None, :]     # (1, K_pad)

    grid_b = B_pad // tile_b
    kernel = functools.partial(_clustering_kernel, num_clusters=K)

    dist1_p, dist2_p = pl.pallas_call(
        kernel,
        out_shape=(
            jax.ShapeDtypeStruct((B_pad, K_pad), jnp.float32),
            jax.ShapeDtypeStruct((B_pad, K_pad), jnp.float32),
        ),
        grid=(grid_b,),
        in_specs=[
            pl.BlockSpec((tile_b, D), lambda i: (i, 0)),   # x batch tile
            pl.BlockSpec((K_pad, D), lambda i: (0, 0)),    # centroids, resident
            pl.BlockSpec((1, K_pad), lambda i: (0, 0)),    # ||w||^2, resident
        ],
        out_specs=(
            pl.BlockSpec((tile_b, K_pad), lambda i: (i, 0)),
            pl.BlockSpec((tile_b, K_pad), lambda i: (i, 0)),
        ),
        compiler_params=pltpu.CompilerParams(
            dimension_semantics=("parallel",),
        ),
        cost_estimate=pl.CostEstimate(
            flops=2 * B_pad * K_pad * D,
            transcendentals=B_pad * K_pad,
            bytes_accessed=4 * (B_pad * D + K_pad * D + 2 * B_pad * K_pad),
        ),
    )(x, w_pad, w2)

    return dist1_p[:B, :K], dist2_p[:B, :K]


def _reference(x, weight):
    """Pure-JAX reference mirroring the PyTorch forward exactly."""
    diff = x[:, None, :] - weight[None, :, :]
    dist1 = jnp.sum(diff * diff, axis=2)
    temp = dist1 - jnp.min(dist1, axis=1, keepdims=True)
    q = jnp.exp(-temp)
    q = q / jnp.sum(q, axis=1, keepdims=True)
    q = q ** 2
    q = q / jnp.sum(q, axis=1, keepdims=True)
    return dist1, dist1 * q


if __name__ == "__main__":
    # Small shapes consistent with the module's 2-D (batch, feature) input.
    batch = 16
    in_features = 32
    out_features = 10     # exercises the K -> 128 lane-padding path

    key = jax.random.PRNGKey(0)
    kx, kw = jax.random.split(key)

    # Deterministic xavier_uniform_-style init: bound = sqrt(6 / (fan_in + fan_out))
    bound = math.sqrt(6.0 / (in_features + out_features))
    weight = jax.random.uniform(
        kw, (out_features, in_features), dtype=jnp.float32,
        minval=-bound, maxval=bound)

    x = jax.random.normal(kx, (batch, in_features), dtype=jnp.float32)

    # tile_b=8 -> 2 grid steps: exercises batch tiling + resident centroids.
    dist1, dist2 = clustering_layer(x, weight, tile_b=8)
    jax.block_until_ready((dist1, dist2))

    ref1, ref2 = _reference(x, weight)
    assert dist1.shape == (batch, out_features)
    assert dist2.shape == (batch, out_features)
    # dist1: matmul-expansion vs subtract-square differs by a few ulps.
    assert jnp.allclose(dist1, ref1, rtol=1e-4, atol=1e-4)
    # dist2: fused normalization + approximate EUP reciprocal.
    assert jnp.allclose(dist2, ref2, rtol=5e-3, atol=1e-3)

    print("KERNEL_OK")
</pallas_src>

<mosaic_0001>
module attributes {stable_mosaic.version = 11 : i64} {
  func.func @_clustering_kernel(%arg0: i32, %arg1: memref<8x32xf32, #tpu.memory_space<vmem>>, %arg2: memref<128x32xf32, #tpu.memory_space<vmem>>, %arg3: memref<1x128xf32, #tpu.memory_space<vmem>>, %arg4: memref<8x128xf32, #tpu.memory_space<vmem>>, %arg5: memref<8x128xf32, #tpu.memory_space<vmem>>) attributes {dimension_semantics = [#tpu.dimension_semantics<parallel>], iteration_bounds = array<i64: 2>, scalar_prefetch = 0 : i64, scratch_operands = 0 : i64, tpu.core_type = #tpu.core_type<tc>, window_params = [{transform_indices = @transform_0, window_bounds = array<i64: 8, 32>}, {pipeline_mode = #tpu.pipeline_mode<synchronous>, transform_indices = @transform_1, window_bounds = array<i64: 128, 32>}, {pipeline_mode = #tpu.pipeline_mode<synchronous>, transform_indices = @transform_2, window_bounds = array<i64: 1, 128>}, {transform_indices = @transform_3, window_bounds = array<i64: 8, 128>}, {transform_indices = @transform_4, window_bounds = array<i64: 8, 128>}]} {
    %c0 = arith.constant 0 : index
    %c0_0 = arith.constant 0 : index
    %0 = vector.load %arg1[%c0, %c0_0] : memref<8x32xf32, #tpu.memory_space<vmem>>, vector<8x32xf32>
    %c0_1 = arith.constant 0 : index
    %c0_2 = arith.constant 0 : index
    %1 = vector.load %arg2[%c0_1, %c0_2] : memref<128x32xf32, #tpu.memory_space<vmem>>, vector<128x32xf32>
    %c0_3 = arith.constant 0 : index
    %c0_4 = arith.constant 0 : index
    %2 = vector.load %arg3[%c0_3, %c0_4] : memref<1x128xf32, #tpu.memory_space<vmem>>, vector<1x128xf32>
    %cst = arith.constant dense<0.000000e+00> : vector<8x128xf32>
    %3 = tpu.matmul %0, %1, %cst {dimension_numbers = #tpu.dot_dimension_numbers<[1], [1], [0], [0], [0, 0, 1, 0], [], []>} : vector<8x32xf32>, vector<128x32xf32>, vector<8x128xf32> -> vector<8x128xf32>
    %4 = arith.mulf %0, %0 : vector<8x32xf32>
    %cst_5 = arith.constant dense<0.000000e+00> : vector<8xf32>
    %5 = vector.multi_reduction <add>, %4, %cst_5 [1] : vector<8x32xf32> to vector<8xf32>
    %6 = vector.shape_cast %5 : vector<8xf32> to vector<8x1xf32>
    %7 = vector.broadcast %6 : vector<8x1xf32> to vector<8x128xf32>
    %8 = vector.broadcast %2 : vector<1x128xf32> to vector<8x128xf32>
    %9 = arith.addf %7, %8 : vector<8x128xf32>
    %cst_6 = arith.constant 2.000000e+00 : f32
    %10 = vector.broadcast %cst_6 : f32 to vector<8x128xf32>
    %11 = arith.mulf %10, %3 : vector<8x128xf32>
    %12 = arith.subf %9, %11 : vector<8x128xf32>
    %cst_7 = arith.constant 0.000000e+00 : f32
    %13 = vector.broadcast %cst_7 : f32 to vector<8x128xf32>
    %14 = arith.maximumf %12, %13 : vector<8x128xf32>
    %15 = tpu.iota {dimensions = array<i32: 1>} : vector<8x128xi32>
    %c10_i32 = arith.constant 10 : i32
    %16 = vector.broadcast %c10_i32 : i32 to vector<8x128xi32>
    %17 = arith.cmpi slt, %15, %16 : vector<8x128xi32>
    %cst_8 = arith.constant 0x7F800000 : f32
    %18 = vector.broadcast %cst_8 : f32 to vector<8x128xf32>
    %19 = arith.select %17, %14, %18 : vector<8x128xi1>, vector<8x128xf32>
    %cst_9 = arith.constant dense<0x7F800000> : vector<8xf32>
    %20 = vector.multi_reduction <minimumf>, %19, %cst_9 [1] : vector<8x128xf32> to vector<8xf32>
    %21 = vector.shape_cast %20 : vector<8xf32> to vector<8x1xf32>
    %22 = vector.broadcast %21 : vector<8x1xf32> to vector<8x128xf32>
    %23 = arith.subf %14, %22 : vector<8x128xf32>
    %cst_10 = arith.constant -2.000000e+00 : f32
    %24 = vector.broadcast %cst_10 : f32 to vector<8x128xf32>
    %25 = arith.mulf %24, %23 : vector<8x128xf32>
    %26 = math.exp %25 : vector<8x128xf32>
    %cst_11 = arith.constant 0.000000e+00 : f32
    %27 = vector.broadcast %cst_11 : f32 to vector<8x128xf32>
    %28 = arith.select %17, %26, %27 : vector<8x128xi1>, vector<8x128xf32>
    %cst_12 = arith.constant dense<0.000000e+00> : vector<8xf32>
    %29 = vector.multi_reduction <add>, %28, %cst_12 [1] : vector<8x128xf32> to vector<8xf32>
    %30 = vector.shape_cast %29 : vector<8xf32> to vector<8x1xf32>
    %31 = tpu.reciprocal %30 {approx = true} : vector<8x1xf32> -> vector<8x1xf32>
    %32 = vector.broadcast %31 : vector<8x1xf32> to vector<8x128xf32>
    %33 = arith.mulf %28, %32 : vector<8x128xf32>
    %c0_13 = arith.constant 0 : index
    %c0_14 = arith.constant 0 : index
    %34 = vector.load %arg4[%c0_13, %c0_14] : memref<8x128xf32, #tpu.memory_space<vmem>>, vector<8x128xf32>
    tpu.vector_store %arg4[%c0_13, %c0_14], %14 {strides = array<i32>} : memref<8x128xf32, #tpu.memory_space<vmem>>, vector<8x128xf32>,
    %35 = arith.mulf %14, %33 : vector<8x128xf32>
    %c0_15 = arith.constant 0 : index
    %c0_16 = arith.constant 0 : index
    %36 = vector.load %arg5[%c0_15, %c0_16] : memref<8x128xf32, #tpu.memory_space<vmem>>, vector<8x128xf32>
    tpu.vector_store %arg5[%c0_15, %c0_16], %35 {strides = array<i32>} : memref<8x128xf32, #tpu.memory_space<vmem>>, vector<8x128xf32>,
    return
  }
  func.func @transform_0(%arg0: i32) -> (i32, i32) {
    %c0_i32 = arith.constant 0 : i32
    %c0_i32_0 = arith.constant 0 : i32
    return %arg0, %c0_i32 : i32, i32
  }
  func.func @transform_1(%arg0: i32) -> (i32, i32) {
    %c0_i32 = arith.constant 0 : i32
    %c0_i32_0 = arith.constant 0 : i32
    %c0_i32_1 = arith.constant 0 : i32
    return %c0_i32, %c0_i32_0 : i32, i32
  }
  func.func @transform_2(%arg0: i32) -> (i32, i32) {
    %c0_i32 = arith.constant 0 : i32
    %c0_i32_0 = arith.constant 0 : i32
    %c0_i32_1 = arith.constant 0 : i32
    return %c0_i32, %c0_i32_0 : i32, i32
  }
  func.func @transform_3(%arg0: i32) -> (i32, i32) {
    %c0_i32 = arith.constant 0 : i32
    %c0_i32_0 = arith.constant 0 : i32
    return %arg0, %c0_i32 : i32, i32
  }
  func.func @transform_4(%arg0: i32) -> (i32, i32) {
    %c0_i32 = arith.constant 0 : i32
    %c0_i32_0 = arith.constant 0 : i32
    return %arg0, %c0_i32 : i32, i32
  }
}

</mosaic_0001>

<bundles_post_ra>
// kernel: tpu_custom_call.1
= control target key start
LH: loop header
LB: loop body
LE: loop exit
PB: predicated region body
PF: predicated region fallthrough
CT: control target
= control target key end

     0   :  { %10 = vsyncpa [#allocation3], 0  ;;  %s828_s0 = inlined_call_operand.vmem [shape: f32[16,32], index: 0, kind: input, shape index: {}]   ;;  %s829_s1 = inlined_call_operand.vmem [shape: f32[128,32], index: 1, kind: input, shape index: {}]   ;;  %s830_s2 = inlined_call_operand.vmem [shape: f32[1,128], index: 2, kind: input, shape index: {}]   ;;  %s831_s3 = inlined_call_operand.hbm [shape: f32[16,128], index: 3, kind: output, shape index: {0}]   ;;  %s832_s4 = inlined_call_operand.hbm [shape: f32[16,128], index: 4, kind: output, shape index: {1}]  }
   0x1   :  { %12 = vsyncpa [#allocation3 + $0x1], 0 }
   0x2   :  { %13 = vsyncpa [#allocation5], 0 }
   0x3   :  { %15 = vsyncpa [#allocation5 + $0x1], 0  ;;  %s650_s15 = smov 0   ;;  %s652_s16 = smov 0  }
   0x4   :  { %s654_s17 = smov 0   ;;  %s656_s18 = smov 0  }
   0x5 LB: > { %s671_s19 = sadd.s32 4294967295, %s623_s18   ;;  %s450_s20 = sadd.s32 4294967294, %s623_s18   ;;  %s623_s18 = sphi %s656_s18, %s838_s18   ;;  %s619_s17 = sphi %s654_s17, %s837_s17   ;;  %s615_s16 = sphi %s652_s16, %s836_s16   ;;  %s611_s15 = sphi %s650_s15, %s835_s15  }
   0x6   : > { %s675_s21 = sadd.s32 1, %s623_s18   ;;  %s96_s22 = sadd.s32 1, %s619_s17 }
   0x7   : > { %s93_s23 = ssub.s32 %s623_s18, %s675_s21  ;;  %p106_p0 = scmp.ne.s32.totalorder %s619_s17, %s615_s16 }
   0x8   : > { %p94_p1 = scmp.eq.s32.totalorder %s93_s23, 0  ;;  %p107_p2 = scmp.eq.s32.totalorder %s671_s19, 1 }
   0x9   : > { %p112_p3 = scmp.ne.s32.totalorder %s615_s16, %s611_s15  ;;  %p113_p4 = scmp.eq.s32.totalorder %s450_s20, 1 }
   0xa   : > { %s686_s24 = scalar_select %p94_p1, %s619_s17, %s96_s22  }
   0xb   : > { %p688_p5 = por %p107_p2, %p106_p0  ;;  %p692_p6 = por %p113_p4, %p112_p3 }
   0xc   : > { %p453_p7 = scmp.ge.s32.totalorder %s623_s18, 1  ;;  %p170_p8 = scmp.lt.s32.totalorder %s623_s18, 3 }
   0xe   : > { %p171_p9 = pnand %p453_p7, %p170_p8 }
   0xf   : > { %p200_p10 = scmp.lt.s32.totalorder (!%p171_p9), %s671_s19, 1  ;;  %s773_s6 = sand.u32 (!%p171_p9), 1, %s615_s16  }
  0x10   : > { %174 = sbr.rel (%p171_p9) target bundleno = 479 (0x1df), region = 32  ;;  %s454_s7 = sshll.u32 (!%p171_p9), %s773_s6, 3 }
  0x11   : > { %s192_s8 = scalar_lea.vmem (!%p171_p9), [#allocation2], %s454_s7  ;;  %s476_s9 = sshll.u32 (!%p171_p9), %s671_s19, 3 }
  0x12   : > { %s339_s12 = scalar_lea.hbm (!%p171_p9), %s831_s3, %s476_s9  ;;  %s324_s20 = scalar_lea.sflag (!%p171_p9), [#allocation3], %s773_s6 }
  0x13   : > { %s343_s14 = sshll.u32 (!%p171_p9), %s339_s12, 4  ;;  %s549_s28 = scalar_lea.hbm (!%p171_p9), %s831_s3, 16  ;;  %s344_s14 = int_to_ptr.hbm [resolvable:$true] %s343_s14 }
  0x15   : > { %v220_v0 = vld [vmem:[%s829_s1 + $0x78] sm:$0xff]  ;;  %vm222_vm0 = vcmask 261120   ;;  %v219_v1 = vld [vmem:[%s829_s1 + $0x70] sm:$0xff]  ;;  %v218_v2 = vld [vmem:[%s829_s1 + $0x68] sm:$0xff]  ;;  %s201_s13 = scalar_select %p200_p10, %s671_s19, 1  ;;  %v305_v21 = vlaneseq }
  0x16   : > { %457 = vmatpush.xpose.msk.msra.mxu0 %vm222_vm0, %v220_v0  ;;  %v217_v3 = vld [vmem:[%s829_s1 + $0x60] sm:$0xff]  ;;  %v216_v4 = vld [vmem:[%s829_s1 + $0x58] sm:$0xff]  ;;  %v215_v5 = vld [vmem:[%s829_s1 + $0x50] sm:$0xff] }
  0x17   : > { %v214_v6 = vld [vmem:[%s829_s1 + $0x48] sm:$0xff]  ;;  %s456_s22 = sshll.u32 %s201_s13, 3  ;;  %v213_v7 = vld [vmem:[%s829_s1 + $0x40] sm:$0xff]  ;;  %v212_v8 = vld [vmem:[%s829_s1 + $0x38] sm:$0xff]  ;;  %v306_v24 = vand.u32 127, %v305_v21  ;;  %s341_s13 = sshll.u32 %s192_s8, 4  ;;  %s342_s13 = int_to_ptr.vmem [resolvable:$true] %s341_s13 }
  0x18   : > { %s203_s30 = scalar_lea.vmem %s828_s0, %s456_s22  ;;  %v211_v11 = vld [vmem:[%s829_s1 + $0x30] sm:$0xff]  ;;  %v210_v13 = vld [vmem:[%s829_s1 + $0x28] sm:$0xff]  ;;  %v209_v14 = vld [vmem:[%s829_s1 + $0x20] sm:$0xff]  ;;  %s543_s22 = sshra.s32 %s344_s14, 4  ;;  %s544_s22 = int_to_ptr.hbm [resolvable:$true] %s543_s22 }
  0x19   : > { %v204_v9 = vld [vmem:[%s203_s30] sm:$0xff]  ;;  %v208_v15 = vld [vmem:[%s829_s1 + $0x18] sm:$0xff]  ;;  %v207_v16 = vld [vmem:[%s829_s1 + $0x10] sm:$0xff]  ;;  %vm307_vm1 = vcmp.lt.s32.totalorder %v306_v24, 10  ;;  %s545_s23 = scalar_lea.hbm %s544_s22, 8  ;;  %p550_p0 = scmp.lt.s32.totalorder %s544_s22, %s831_s3 }
  0x1a   : > { %458 = vmatpush.xpose.msk.msra.mxu0 %vm222_vm0, %v219_v1  ;;  %v294_v10 = vmul.f32 %v204_v9, %v204_v9  ;;  %v206_v17 = vld [vmem:[%s829_s1 + $0x8] sm:$0xff]  ;;  %v205_v18 = vld [vmem:[%s829_s1] sm:$0xff]  ;;  %p546_p11 = scmp.ne.s32.totalorder %s544_s22, %s545_s23  ;;  %p551_p1 = scmp.lt.s32.totalorder %s549_s28, %s545_s23 }
  0x1b   : > { %v524_v19 = vld [vmem:[%s830_s2] ss:$0 sm:$0xff] }
  0x1c   : > { %v295_v12 = vsel %vm222_vm0, %v294_v10, 0.0  ;;  %p547_p12 = pnand %p546_p11, %p688_p5  ;;  %p552_p2 = por %p551_p1, %p550_p0 }
  0x1d   : > { %296 = vadd.xlane.f32.xlu0 %v295_v12 }
  0x1e   : > { %459 = vmatpush.xpose.msk.msra.mxu0 %vm222_vm0, %v218_v2  ;;  %p548_p13 = pneg %p547_p12 }
  0x20   : > { %p553_p3 = pnand %p552_p2, %p548_p13 }
  0x22   : > { %460 = vmatpush.xpose.msk.msra.mxu0 %vm222_vm0, %v217_v3 }
  0x26   : > { %461 = vmatpush.xpose.msk.msra.mxu0 %vm222_vm0, %v216_v4 }
  0x2a   : > { %462 = vmatpush.xpose.msk.msra.mxu0 %vm222_vm0, %v215_v5 }
  0x2e   : > { %463 = vmatpush.xpose.msk.msra.mxu0 %vm222_vm0, %v214_v6 }
  0x32   : > { %464 = vmatpush.xpose.msk.msra.mxu0 %vm222_vm0, %v213_v7 }
  0x36   : > { %465 = vmatpush.xpose.msk.msra.mxu0 %vm222_vm0, %v212_v8 }
  0x3a   : > { %466 = vmatpush.xpose.msk.msra.mxu0 %vm222_vm0, %v211_v11 }
  0x3e   : > { %467 = vmatpush.xpose.msk.msra.mxu0 %vm222_vm0, %v210_v13 }
  0x42   : > { %468 = vmatpush.xpose.msk.msra.mxu0 %vm222_vm0, %v209_v14 }
  0x46   : > { %469 = vmatpush.xpose.msk.msra.mxu0 %vm222_vm0, %v208_v15 }
  0x4a   : > { %470 = vmatpush.xpose.msk.msra.mxu0 %vm222_vm0, %v207_v16 }
  0x4e   : > { %471 = vmatpush.xpose.msk.msra.mxu0 %vm222_vm0, %v206_v17 }
  0x52   : > { %472 = vmatpush.xpose.msk.msra.mxu0 %vm222_vm0, %v205_v18 }
  0x55   : > { %473 = vmatmul.msk.f32.vlgmr.msra.gmra.mxu0 %vm222_vm0, %v204_v9 }
  0x90   : > { %v297_v20 = vpop.xlane.xlu0 %296 }
  0x91   : > { %v301_v22 = vadd.f32 %v524_v19, %v297_v20 }
  0xd2   : > { %v291_v23 = vpop.f32.mrf.mxu0 }
  0xd3   : > { %v302_v25 = vmul.f32 2.0, %v291_v23 }
  0xd5   : > { %v303_v26 = vsub.f32 %v301_v22, %v302_v25 }
  0xd7   : > { %v304_v27 = vmax.f32 %v303_v26, 0.0 }
  0xd9   : > { %v308_v28 = vsel %vm307_vm1, %v304_v27, inf  ;;  %320 = vst [vmem:[%s192_s8] sm:$0xff] %v304_v27 }
  0xda   : > { %309 = vmin.xlane.f32.xlu0 %v308_v28 }
 0x14d   : > { %v310_v29 = vpop.xlane.xlu0 %309 }
 0x14e   : > { %v311_v30 = vsub.f32 %v304_v27, %v310_v29 }
 0x150   : > { %v312_v31 = vmul.f32 -2.0, %v311_v30 }
 0x152   : > { %v313_v32 = vmul.f32 1.442695, %v312_v31 }
 0x154   : > { %525 = vpow2.f32 %v313_v32 }
 0x15a   : > { %v526_v33 = vpop.eup %525 }
 0x15b   : > { %v315_v34 = vsel %vm307_vm1, %v526_v33, 0.0 }
 0x15c   : > { %556 = shalt.err (!%p553_p3)
}
 0x15d   : > { %480 = dma.vmem_to_hbm [thread:$0]  (%p688_p5), %s342_s13, 128, %s344_s14, %s324_s20   ;;  %316 = vadd.xlane.f32.xlu1 %v315_v34 }
 0x15e   : > { %s353_s10 = scalar_lea.hbm %s832_s4, %s476_s9  ;;  %s199_s11 = scalar_lea.vmem [#allocation4], %s454_s7 }
 0x15f   : > { %s355_s12 = sshll.u32 %s199_s11, 4  ;;  %s357_s22 = sshll.u32 %s353_s10, 4  ;;  %s356_s12 = int_to_ptr.vmem [resolvable:$true] %s355_s12  ;;  %s358_s22 = int_to_ptr.hbm [resolvable:$true] %s357_s22 }
 0x160   : > { %s329_s23 = scalar_lea.sflag [#allocation5], %s773_s6  ;;  %s571_s13 = sshra.s32 %s358_s22, 4  ;;  %s572_s13 = int_to_ptr.hbm [resolvable:$true] %s571_s13 }
 0x161   : > { %s573_s14 = scalar_lea.hbm %s572_s13, 8  ;;  %s577_s19 = scalar_lea.hbm %s832_s4, 16 }
 0x162   : > { %p574_p4 = scmp.ne.s32.totalorder %s572_s13, %s573_s14  ;;  %p578_p9 = scmp.lt.s32.totalorder %s572_s13, %s832_s4 }
 0x163   : > { %p579_p10 = scmp.lt.s32.totalorder %s577_s19, %s573_s14 }
 0x164   : > { %p575_p7 = pnand %p574_p4, %p688_p5 }
 0x165   : > { %p580_p11 = por %p579_p10, %p578_p9 }
 0x166   : > { %p576_p8 = pneg %p575_p7 }
 0x168   : > { %p581_p12 = pnand %p580_p11, %p576_p8 }
 0x1d0   : > { %v317_v35 = vpop.xlane.xlu1 %316 }
 0x1d1   : > { %527 = vrcp.f32 %v317_v35 }
 0x1d7   : > { %v528_v36 = vpop.eup %527 }
 0x1d8   : > { %v319_v37 = vmul.f32 %v528_v36, %v315_v34 }
 0x1da   : > { %v321_v38 = vmul.f32 %v319_v37, %v304_v27 }
 0x1dc   : > { %322 = vst [vmem:[%s199_s11] sm:$0xff] %v321_v38 }
 0x1dd   : > { %584 = shalt.err (!%p581_p12)
}
 0x1de   : > { %481 = dma.vmem_to_hbm [thread:$0]  (%p688_p5), %s356_s12, 128, %s358_s22, %s329_s23  }
 0x1df PF: > { %p491_p13 = scmp.ge.s32.totalorder %s623_s18, 2  ;;  %s369_s6 = sand.u32 1, %s611_s15  }
 0x1e0   : > { %s370_s28 = scalar_lea.sflag [#allocation3], %s369_s6 }
 0x1e1   : > { %p485_p0 = pnand %p491_p13, %p692_p6 }
 0x1e3   : > { %p486_p1 = pneg %p485_p0 }
 0x1e5   : > { %602 = dma.done.wait (%p486_p1), %s370_s28, 128  }
 0x1e6   : > { %604 = vsyncadd (%p486_p1), %s370_s28, 4294967168  ;;  %s380_s29 = scalar_lea.sflag [#allocation5], %s369_s6 }
 0x1e7   : > { %606 = dma.done.wait (%p486_p1), %s380_s29, 128  }
 0x1e8   : > { %608 = vsyncadd (%p486_p1), %s380_s29, 4294967168  ;;  %p18_p5 = scmp.ge.s32.totalorder %s675_s21, 4   ;;  %s835_s15 = smov %s615_s16 }
 0x1e9   : > { %s836_s16 = smov %s619_s17  ;;  %s837_s17 = smov %s686_s24 }
 0x1ea   : > { %s838_s18 = smov %s675_s21  ;;  %20 = sbr.rel (!%p18_p5) target bundleno = 5 (0x5), region = 84 }
 0x1ef   :  { %386 = vsyncpa [#allocation3], 1 }
 0x1f0   :  { %388 = vsyncpa [#allocation3 + $0x1], 1 }
 0x1f1   :  { %389 = vsyncpa [#allocation5], 1 }
 0x1f2   :  { %391 = vsyncpa [#allocation5 + $0x1], 1 }

</bundles_post_ra>
